<compile_context>
chip_gen: v6e
topology: v6e:2x2x1
jax: 0.10.0
libtpu: 0.0.40
codegen_flags: <defaults>
</compile_context>

<pallas_src>
import functools

import jax
import jax.numpy as jnp
from jax.experimental import pallas as pl
from jax.experimental.pallas import tpu as pltpu

LANE = 128


def _gcn_layer_kernel(a_ref, dinv_row_ref, dinv_col_ref, x_ref, w_ref, b_ref,
                      o_ref, acc_ref, *, epilogue, valid_cols):
    """o[i] = epilogue( dinv[i] * sum_k A[i,k] @ (dinv[k] * (X[k] @ W)) + b )."""
    k = pl.program_id(1)

    @pl.when(k == 0)
    def _init():
        acc_ref[...] = jnp.zeros_like(acc_ref)

    # Linear first (GCNConv order), then the right-hand D^{-1/2} scaling.
    # MXU in bf16, f32 accumulation; scaling on the VPU in f32.
    z = jnp.dot(x_ref[...], w_ref[...], preferred_element_type=jnp.float32)
    z = z * dinv_col_ref[...].astype(jnp.float32)

    # Propagation: accumulate A[i,k] @ Z_k into the resident f32 accumulator.
    acc_ref[...] += jnp.dot(a_ref[...], z.astype(a_ref.dtype),
                            preferred_element_type=jnp.float32)

    @pl.when(k == pl.num_programs(1) - 1)
    def _finalize():
        y = acc_ref[...] * dinv_row_ref[...].astype(jnp.float32)
        y = y + b_ref[...].astype(jnp.float32)
        if epilogue == "relu":
            o_ref[...] = jnp.maximum(y, 0.0).astype(o_ref.dtype)
        else:  # log_softmax over the first `valid_cols` lanes (rest is padding)
            col = jax.lax.broadcasted_iota(jnp.int32, y.shape, 1)
            y = jnp.where(col < valid_cols, y, -1e30)
            m = jnp.max(y, axis=1, keepdims=True)
            ys = y - m
            lse = jnp.log(jnp.sum(jnp.exp(ys), axis=1, keepdims=True))
            o_ref[...] = (ys - lse).astype(o_ref.dtype)


def gcn_layer(a, dinv, x, w, b, *, epilogue, valid_cols, out_dtype,
              tm=128, tk=128):
    n = a.shape[0]
    f = x.shape[1]
    c = w.shape[1]
    assert n % tm == 0 and n % tk == 0, "pad N to a multiple of the tile size"

    flops = 2 * n * n * c + 2 * (n // tm) * n * f * c
    transcendentals = n * c if epilogue == "log_softmax" else 0
    bytes_accessed = (a.size * a.dtype.itemsize
                      + (n // tm) * x.size * x.dtype.itemsize
                      + w.size * w.dtype.itemsize
                      + 2 * n * 4
                      + n * c * jnp.dtype(out_dtype).itemsize)

    kernel = functools.partial(_gcn_layer_kernel, epilogue=epilogue,
                               valid_cols=valid_cols)
    return pl.pallas_call(
        kernel,
        out_shape=jax.ShapeDtypeStruct((n, c), out_dtype),
        grid_spec=pltpu.PrefetchScalarGridSpec(
            num_scalar_prefetch=0,
            grid=(n // tm, n // tk),
            in_specs=[
                pl.BlockSpec((tm, tk), lambda i, k: (i, k)),  # A tile
                pl.BlockSpec((tm, 1), lambda i, k: (i, 0)),   # dinv (row scale)
                pl.BlockSpec((tk, 1), lambda i, k: (k, 0)),   # dinv (col scale)
                pl.BlockSpec((tk, f), lambda i, k: (k, 0)),   # X block
                pl.BlockSpec((f, c), lambda i, k: (0, 0)),    # W (whole)
                pl.BlockSpec((1, c), lambda i, k: (0, 0)),    # bias
            ],
            out_specs=pl.BlockSpec((tm, c), lambda i, k: (i, 0)),
            scratch_shapes=[pltpu.VMEM((tm, c), jnp.float32)],
        ),
        compiler_params=pltpu.CompilerParams(
            dimension_semantics=("parallel", "arbitrary")),
        cost_estimate=pl.CostEstimate(flops=flops,
                                      transcendentals=transcendentals,
                                      bytes_accessed=bytes_accessed),
    )(a, dinv, dinv, x, w, b)


def _pad_cols(x, width):
    return jnp.pad(x, ((0, 0), (0, width - x.shape[1])))


def _pad_2d(x, shape):
    return jnp.pad(x, ((0, shape[0] - x.shape[0]), (0, shape[1] - x.shape[1])))


def gcn_label_only_forward(a_bf16, dinv, x_p, w1_p, b1_p, w2_p, b2_p, *,
                           num_classes, tm=128, tk=128):
    """Eval-mode forward of GCNLabelOnly (num_layers=2)."""
    h = gcn_layer(a_bf16, dinv, x_p, w1_p, b1_p, epilogue="relu",
                  valid_cols=w1_p.shape[1], out_dtype=jnp.bfloat16,
                  tm=tm, tk=tk)
    # TODO(synk): F.dropout(p=0.5) is a no-op at inference (training=False); not emitted.
    out = gcn_layer(a_bf16, dinv, h, w2_p, b2_p, epilogue="log_softmax",
                    valid_cols=num_classes, out_dtype=jnp.float32,
                    tm=tm, tk=tk)
    return out[:, :num_classes]


def _glorot(key, shape):
    lim = jnp.sqrt(6.0 / (shape[0] + shape[1]))
    return jax.random.uniform(key, shape, jnp.float32, -lim, lim)


if __name__ == "__main__":
    key = jax.random.PRNGKey(0)
    k_lab, k_src, k_off, k_w1, k_w2 = jax.random.split(key, 5)

    N, E = 256, 1024             # nodes, random edge endpoints
    num_classes, hidden = 8, 16  # dataset.num_classes, hidden

    # "Label only" node features: one-hot labels, [N, num_classes].
    labels = jax.random.randint(k_lab, (N,), 0, num_classes)
    x = jax.nn.one_hot(labels, num_classes, dtype=jnp.float32)

    # Random undirected edges (no self loops); dense A_hat = A + I (plain-JAX glue).
    src = jax.random.randint(k_src, (E,), 0, N)
    dst = (src + jax.random.randint(k_off, (E,), 1, N)) % N
    a = jnp.zeros((N, N), jnp.float32)
    a = a.at[src, dst].set(1.0)
    a = a.at[dst, src].set(1.0)
    a = jnp.maximum(a, jnp.eye(N, dtype=jnp.float32))   # self loops, no double counting
    deg = jnp.sum(a, axis=1, keepdims=True)
    dinv = jax.lax.rsqrt(jnp.maximum(deg, 1e-12))        # (N, 1) = D^{-1/2}

    # GCNConv parameters (glorot weights, zero bias, as in PyG).
    w1 = _glorot(k_w1, (num_classes, hidden))
    b1 = jnp.zeros((1, hidden), jnp.float32)
    w2 = _glorot(k_w2, (hidden, num_classes))
    b2 = jnp.zeros((1, num_classes), jnp.float32)

    # Lane-dense padding to 128 + bf16 MXU operands.
    x_p = _pad_cols(x, LANE).astype(jnp.bfloat16)
    w1_p = _pad_2d(w1, (LANE, LANE)).astype(jnp.bfloat16)
    b1_p = _pad_cols(b1, LANE)
    w2_p = _pad_2d(w2, (LANE, LANE)).astype(jnp.bfloat16)
    b2_p = _pad_cols(b2, LANE)
    a_bf16 = a.astype(jnp.bfloat16)

    out = gcn_label_only_forward(a_bf16, dinv, x_p, w1_p, b1_p, w2_p, b2_p,
                                 num_classes=num_classes)
    out = jax.block_until_ready(out)

    # Plain-JAX f32 reference.
    s = dinv * a * dinv.T
    h_ref = jnp.maximum(s @ (x @ w1) + b1, 0.0)
    ref = jax.nn.log_softmax(s @ (h_ref @ w2) + b2, axis=1)

    assert out.shape == (N, num_classes)
    assert bool(jnp.allclose(jnp.exp(out).sum(axis=1), 1.0, atol=1e-3))
    assert float(jnp.max(jnp.abs(out - ref))) < 0.1
    print("KERNEL_OK")
</pallas_src>

<mosaic_0001>
module attributes {stable_mosaic.version = 11 : i64} {
  func.func @_gcn_layer_kernel(%arg0: i32, %arg1: i32, %arg2: memref<128x128xbf16, #tpu.memory_space<vmem>>, %arg3: memref<128x1xf32, #tpu.memory_space<vmem>>, %arg4: memref<128x1xf32, #tpu.memory_space<vmem>>, %arg5: memref<128x128xbf16, #tpu.memory_space<vmem>>, %arg6: memref<128x128xbf16, #tpu.memory_space<vmem>>, %arg7: memref<1x128xf32, #tpu.memory_space<vmem>>, %arg8: memref<128x128xbf16, #tpu.memory_space<vmem>>, %arg9: memref<128x128xf32, #tpu.memory_space<vmem>>) attributes {dimension_semantics = [#tpu.dimension_semantics<parallel>, #tpu.dimension_semantics<arbitrary>], iteration_bounds = array<i64: 2, 2>, scalar_prefetch = 0 : i64, scratch_operands = 1 : i64, tpu.core_type = #tpu.core_type<tc>, window_params = [{transform_indices = @transform_0, window_bounds = array<i64: 128, 128>}, {transform_indices = @transform_1, window_bounds = array<i64: 128, 1>}, {transform_indices = @transform_2, window_bounds = array<i64: 128, 1>}, {transform_indices = @transform_3, window_bounds = array<i64: 128, 128>}, {pipeline_mode = #tpu.pipeline_mode<synchronous>, transform_indices = @transform_4, window_bounds = array<i64: 128, 128>}, {pipeline_mode = #tpu.pipeline_mode<synchronous>, transform_indices = @transform_5, window_bounds = array<i64: 1, 128>}, {transform_indices = @transform_6, window_bounds = array<i64: 128, 128>}]} {
    %c0_i32 = arith.constant 0 : i32
    %0 = arith.cmpi eq, %arg1, %c0_i32 : i32
    %1 = arith.extui %0 : i1 to i32
    %c0_i32_0 = arith.constant 0 : i32
    %2 = arith.cmpi ne, %1, %c0_i32_0 : i32
    scf.if %2 {
      %cst_14 = arith.constant 0.000000e+00 : f32
      %18 = vector.broadcast %cst_14 : f32 to vector<128x128xf32>
      %c0_15 = arith.constant 0 : index
      %c0_16 = arith.constant 0 : index
      %19 = vector.load %arg9[%c0_15, %c0_16] : memref<128x128xf32, #tpu.memory_space<vmem>>, vector<128x128xf32>
      tpu.vector_store %arg9[%c0_15, %c0_16], %18 {strides = array<i32>} : memref<128x128xf32, #tpu.memory_space<vmem>>, vector<128x128xf32>,
    } else {
    }
    %c0 = arith.constant 0 : index
    %c0_1 = arith.constant 0 : index
    %3 = vector.load %arg5[%c0, %c0_1] : memref<128x128xbf16, #tpu.memory_space<vmem>>, vector<128x128xbf16>
    %c0_2 = arith.constant 0 : index
    %c0_3 = arith.constant 0 : index
    %4 = vector.load %arg6[%c0_2, %c0_3] : memref<128x128xbf16, #tpu.memory_space<vmem>>, vector<128x128xbf16>
    %cst = arith.constant dense<0.000000e+00> : vector<128x128xf32>
    %5 = tpu.matmul %3, %4, %cst {dimension_numbers = #tpu.dot_dimension_numbers<[1], [0], [0], [1], [0, 0, 1, 1], [], []>} : vector<128x128xbf16>, vector<128x128xbf16>, vector<128x128xf32> -> vector<128x128xf32>
    %c0_4 = arith.constant 0 : index
    %c0_5 = arith.constant 0 : index
    %6 = vector.load %arg4[%c0_4, %c0_5] : memref<128x1xf32, #tpu.memory_space<vmem>>, vector<128x1xf32>
    %7 = vector.broadcast %6 : vector<128x1xf32> to vector<128x128xf32>
    %8 = arith.mulf %5, %7 : vector<128x128xf32>
    %c0_6 = arith.constant 0 : index
    %c0_7 = arith.constant 0 : index
    %9 = vector.load %arg9[%c0_6, %c0_7] : memref<128x128xf32, #tpu.memory_space<vmem>>, vector<128x128xf32>
    %c0_8 = arith.constant 0 : index
    %c0_9 = arith.constant 0 : index
    %10 = vector.load %arg2[%c0_8, %c0_9] : memref<128x128xbf16, #tpu.memory_space<vmem>>, vector<128x128xbf16>
    %11 = arith.truncf %8 : vector<128x128xf32> to vector<128x128xbf16>
    %cst_10 = arith.constant dense<0.000000e+00> : vector<128x128xf32>
    %12 = tpu.matmul %10, %11, %cst_10 {dimension_numbers = #tpu.dot_dimension_numbers<[1], [0], [0], [1], [0, 0, 1, 1], [], []>} : vector<128x128xbf16>, vector<128x128xbf16>, vector<128x128xf32> -> vector<128x128xf32>
    %13 = arith.addf %9, %12 : vector<128x128xf32>
    %c0_11 = arith.constant 0 : index
    %c0_12 = arith.constant 0 : index
    %14 = vector.load %arg9[%c0_11, %c0_12] : memref<128x128xf32, #tpu.memory_space<vmem>>, vector<128x128xf32>
    tpu.vector_store %arg9[%c0_11, %c0_12], %13 {strides = array<i32>} : memref<128x128xf32, #tpu.memory_space<vmem>>, vector<128x128xf32>,
    %c1_i32 = arith.constant 1 : i32
    %15 = arith.cmpi eq, %arg1, %c1_i32 : i32
    %16 = arith.extui %15 : i1 to i32
    %c0_i32_13 = arith.constant 0 : i32
    %17 = arith.cmpi ne, %16, %c0_i32_13 : i32
    scf.if %17 {
      %c0_14 = arith.constant 0 : index
      %c0_15 = arith.constant 0 : index
      %18 = vector.load %arg9[%c0_14, %c0_15] : memref<128x128xf32, #tpu.memory_space<vmem>>, vector<128x128xf32>
      %c0_16 = arith.constant 0 : index
      %c0_17 = arith.constant 0 : index
      %19 = vector.load %arg3[%c0_16, %c0_17] : memref<128x1xf32, #tpu.memory_space<vmem>>, vector<128x1xf32>
      %20 = vector.broadcast %19 : vector<128x1xf32> to vector<128x128xf32>
      %21 = arith.mulf %18, %20 : vector<128x128xf32>
      %c0_18 = arith.constant 0 : index
      %c0_19 = arith.constant 0 : index
      %22 = vector.load %arg7[%c0_18, %c0_19] : memref<1x128xf32, #tpu.memory_space<vmem>>, vector<1x128xf32>
      %23 = vector.broadcast %22 : vector<1x128xf32> to vector<128x128xf32>
      %24 = arith.addf %21, %23 : vector<128x128xf32>
      %cst_20 = arith.constant 0.000000e+00 : f32
      %25 = vector.broadcast %cst_20 : f32 to vector<128x128xf32>
      %26 = arith.maximumf %24, %25 : vector<128x128xf32>
      %27 = arith.truncf %26 : vector<128x128xf32> to vector<128x128xbf16>
      %c0_21 = arith.constant 0 : index
      %c0_22 = arith.constant 0 : index
      %28 = vector.load %arg8[%c0_21, %c0_22] : memref<128x128xbf16, #tpu.memory_space<vmem>>, vector<128x128xbf16>
      tpu.vector_store %arg8[%c0_21, %c0_22], %27 {strides = array<i32>} : memref<128x128xbf16, #tpu.memory_space<vmem>>, vector<128x128xbf16>,
    } else {
    }
    return
  }
  func.func @transform_0(%arg0: i32, %arg1: i32) -> (i32, i32) {
    %c0_i32 = arith.constant 0 : i32
    return %arg0, %arg1 : i32, i32
  }
  func.func @transform_1(%arg0: i32, %arg1: i32) -> (i32, i32) {
    %c0_i32 = arith.constant 0 : i32
    %c0_i32_0 = arith.constant 0 : i32
    return %arg0, %c0_i32 : i32, i32
  }
  func.func @transform_2(%arg0: i32, %arg1: i32) -> (i32, i32) {
    %c0_i32 = arith.constant 0 : i32
    %c0_i32_0 = arith.constant 0 : i32
    return %arg1, %c0_i32 : i32, i32
  }
  func.func @transform_3(%arg0: i32, %arg1: i32) -> (i32, i32) {
    %c0_i32 = arith.constant 0 : i32
    %c0_i32_0 = arith.constant 0 : i32
    return %arg1, %c0_i32 : i32, i32
  }
  func.func @transform_4(%arg0: i32, %arg1: i32) -> (i32, i32) {
    %c0_i32 = arith.constant 0 : i32
    %c0_i32_0 = arith.constant 0 : i32
    %c0_i32_1 = arith.constant 0 : i32
    return %c0_i32, %c0_i32_0 : i32, i32
  }
  func.func @transform_5(%arg0: i32, %arg1: i32) -> (i32, i32) {
    %c0_i32 = arith.constant 0 : i32
    %c0_i32_0 = arith.constant 0 : i32
    %c0_i32_1 = arith.constant 0 : i32
    return %c0_i32, %c0_i32_0 : i32, i32
  }
  func.func @transform_6(%arg0: i32, %arg1: i32) -> (i32, i32) {
    %c0_i32 = arith.constant 0 : i32
    %c0_i32_0 = arith.constant 0 : i32
    return %arg0, %c0_i32 : i32, i32
  }
}

</mosaic_0001>

<bundles_post_ra>
// kernel: tpu_custom_call.1
= control target key start
LH: loop header
LB: loop body
LE: loop exit
PB: predicated region body
PF: predicated region fallthrough
CT: control target
= control target key end

     0   :  { %s2210_s0 = inlined_call_operand.vmem [shape: bf16[256,256], index: 0, kind: input, shape index: {}]   ;;  %s2211_s1 = inlined_call_operand.vmem [shape: f32[256,1], index: 1, kind: input, shape index: {}]   ;;  %s2212_s2 = inlined_call_operand.vmem [shape: f32[256,1], index: 2, kind: input, shape index: {}]   ;;  %s2213_s3 = inlined_call_operand.vmem [shape: bf16[256,128], index: 3, kind: input, shape index: {}]   ;;  %s2214_s4 = inlined_call_operand.vmem [shape: bf16[128,128], index: 4, kind: input, shape index: {}]   ;;  %s2215_s5 = inlined_call_operand.vmem [shape: f32[1,128], index: 5, kind: input, shape index: {}]   ;;  %s2216_s6 = inlined_call_operand.hbm [shape: bf16[256,128], index: 6, kind: output, shape index: {}]  }
   0x1   :  { %2223 = sst [smem:[#allocation14_spill]] %s2210_s0 }
   0x2   :  { %11 = vsyncpa [#allocation5], 0 }
   0x3   :  { %13 = vsyncpa [#allocation5 + $0x1], 0  ;;  %s1892_s21 = smov 0   ;;  %s1894_s22 = smov 0  }
   0x4   :  { %s1896_s23 = smov 0   ;;  %s1898_s24 = smov 0  }
   0x5   :  { %s1900_s25 = smov 0   ;;  %s1902_s26 = smov 0  }
   0x6   :  { %s1904_s27 = smov 0   ;;  %s1906_s28 = smov 0  }
   0x7   :  { %s1908_s29 = smov 0   ;;  %s1910_s30 = smov 0  }
   0x8 LB: > { %2224 = sst [smem:[#allocation7_spill]] %s1829_s25  ;;  %s1395_s7 = sadd.s32 4294967295, %s1849_s30   ;;  %s1849_s30 = sphi %s1910_s30, %s19_s30   ;;  %s1845_s29 = sphi %s1908_s29, %s2242_s29   ;;  %s1841_s28 = sphi %s1906_s28, %s2241_s28   ;;  %s1837_s27 = sphi %s1904_s27, %s2240_s27   ;;  %s1833_s26 = sphi %s1902_s26, %s2239_s26   ;;  %s1829_s25 = sphi %s1900_s25, %s2238_s25   ;;  %s1825_s24 = sphi %s1898_s24, %s2246_s24   ;;  %s1821_s23 = sphi %s1896_s23, %s2245_s23   ;;  %s1817_s22 = sphi %s1894_s22, %s2244_s22   ;;  %s1813_s21 = sphi %s1892_s21, %s2243_s21  }
   0x9   : > { %2225 = sst [smem:[#allocation8_spill]] %s1841_s28  ;;  %s1396_s8 = sadd.s32 4294967294, %s1849_s30  }
   0xa   : > { %2226 = sst [smem:[#allocation9_spill]] %s1845_s29  ;;  %s28_s9 = sadd.s32 1, %s1841_s28 }
   0xb   : > { %s31_s10 = sadd.s32 1, %s1845_s29  ;;  %p29_p0 = scmp.ge.s32.totalorder %s28_s9, 2 }
   0xc   : > { %s40_s11 = sadd.s32 1, %s1829_s25  ;;  %p47_p1 = scmp.ne.s32.totalorder %s1829_s25, %s1825_s24 }
   0xd   : > { %p48_p2 = scmp.eq.s32.totalorder %s1849_s30, 0  ;;  %s2248_s9 = smov (%p29_p0, %s28_s9), 0 }
   0xe   : > { %2227 = sst [smem:[#allocation10_spill]] %s2248_s9  ;;  %s2250_s10 = smov (!%p29_p0, %s31_s10), %s1845_s29 }
   0xf   : > { %s36_s12 = ssub.s32 %s1841_s28, %s2248_s9  ;;  %p1955_p3 = por %p48_p2, %p47_p1 }
  0x10   : > { %p33_p4 = scmp.ge.s32.totalorder %s2250_s10, 2  ;;  %s186_s14 = sadd.s32 1, %s1821_s23 }
  0x11   : > { %p196_p5 = scmp.ne.s32.totalorder %s1821_s23, %s1817_s22  ;;  %p197_p6 = scmp.eq.s32.totalorder %s1395_s7, 3 }
  0x12   : > { %s2252_s10 = smov (%p33_p4, %s2250_s10), 0  ;;  %p202_p8 = scmp.ne.s32.totalorder %s1817_s22, %s1813_s21 }
  0x13   : > { %2229 = sst [smem:[#allocation11_spill]] %s2252_s10  ;;  %p1964_p7 = por %p197_p6, %p196_p5 }
  0x14   : > { %s35_s16 = ssub.s32 %s1845_s29, %s2252_s10  ;;  %p203_p9 = scmp.eq.s32.totalorder %s1396_s8, 3 }
  0x15   : > { %s37_s17 = sor.u32 %s36_s12, %s35_s16  ;;  %p184_p10 = scmp.eq.s32.totalorder %s35_s16, 0 }
  0x16   : > { %p38_p11 = scmp.eq.s32.totalorder %s37_s17, 0  ;;  %p1972_p12 = por %p203_p9, %p202_p8 }
  0x17   : > { %s1977_s19 = scalar_select %p184_p10, %s1821_s23, %s186_s14  }
  0x18   : > { %s1980_s20 = scalar_select %p38_p11, %s1829_s25, %s40_s11  }
  0x19   : > { %2232 = sst [smem:[#allocation12_spill]] %s1977_s19  ;;  %p1398_p13 = scmp.ge.s32.totalorder %s1849_s30, 4 }
  0x1a   : > { %2233 = sst [smem:[#allocation13_spill]] %s1980_s20 }
  0x1b   : > { %225 = sbr.rel (%p1398_p13) target bundleno = 52 (0x34), region = 24 }
  0x20   : > { %228 = sbr.rel (!%p1955_p3) target bundleno = 52 (0x34), region = 28  ;;  %s230_s7 = sand.u32 (%p1955_p3), 1, %s1829_s25  }
  0x21   : > { %s1460_s8 = sshll.u32 (%p1955_p3), %s1845_s29, 5  ;;  %s1399_s12 = sshll.u32 (%p1955_p3), %s230_s7, 6 }
  0x22   : > { %s235_s16 = sadd.s32 (%p1955_p3), %s1841_s28, %s1460_s8  ;;  %s2234_s0 = sld [smem:[#allocation14_spill]] (%p1955_p3) }
  0x23   : > { %s1402_s17 = sshll.u32 (%p1955_p3), %s235_s16, 2  ;;  %s232_s11 = scalar_lea.vmem (%p1955_p3), [#allocation3], %s1399_s12 }
  0x28   : > { %s1991_s14 = scalar_lea.vmem %s2234_s0, %s1402_s17 }
  0x29   : > { %v254_v0 = vld [vmem:[%s1991_s14] sm:$0xf]  ;;  %v256_v1 = vld [vmem:[%s1991_s14 + $0x8] sm:$0xf]  ;;  %v258_v2 = vld [vmem:[%s1991_s14 + $0x10] sm:$0xf] }
  0x2a   : > { %255 = vst [vmem:[%s232_s11] sm:$0xf] %v254_v0  ;;  %257 = vst [vmem:[%s232_s11 + $0x4] sm:$0xf] %v256_v1  ;;  %v260_v3 = vld [vmem:[%s1991_s14 + $0x18] sm:$0xf] }
  0x2b   : > { %259 = vst [vmem:[%s232_s11 + $0x8] sm:$0xf] %v258_v2  ;;  %v262_v4 = vld [vmem:[%s1991_s14 + $0x20] sm:$0xf]  ;;  %v264_v5 = vld [vmem:[%s1991_s14 + $0x28] sm:$0xf] }
  0x2c   : > { %261 = vst [vmem:[%s232_s11 + $0xc] sm:$0xf] %v260_v3  ;;  %263 = vst [vmem:[%s232_s11 + $0x10] sm:$0xf] %v262_v4  ;;  %v266_v6 = vld [vmem:[%s1991_s14 + $0x30] sm:$0xf] }
  0x2d   : > { %265 = vst [vmem:[%s232_s11 + $0x14] sm:$0xf] %v264_v5  ;;  %v268_v7 = vld [vmem:[%s1991_s14 + $0x38] sm:$0xf]  ;;  %v270_v8 = vld [vmem:[%s1991_s14 + $0x40] sm:$0xf] }
  0x2e   : > { %267 = vst [vmem:[%s232_s11 + $0x18] sm:$0xf] %v266_v6  ;;  %269 = vst [vmem:[%s232_s11 + $0x1c] sm:$0xf] %v268_v7  ;;  %v272_v9 = vld [vmem:[%s1991_s14 + $0x48] sm:$0xf] }
  0x2f   : > { %271 = vst [vmem:[%s232_s11 + $0x20] sm:$0xf] %v270_v8  ;;  %v274_v10 = vld [vmem:[%s1991_s14 + $0x50] sm:$0xf]  ;;  %v276_v11 = vld [vmem:[%s1991_s14 + $0x58] sm:$0xf] }
  0x30   : > { %273 = vst [vmem:[%s232_s11 + $0x24] sm:$0xf] %v272_v9  ;;  %275 = vst [vmem:[%s232_s11 + $0x28] sm:$0xf] %v274_v10  ;;  %v278_v12 = vld [vmem:[%s1991_s14 + $0x60] sm:$0xf] }
  0x31   : > { %277 = vst [vmem:[%s232_s11 + $0x2c] sm:$0xf] %v276_v11  ;;  %v280_v13 = vld [vmem:[%s1991_s14 + $0x68] sm:$0xf]  ;;  %v282_v14 = vld [vmem:[%s1991_s14 + $0x70] sm:$0xf] }
  0x32   : > { %279 = vst [vmem:[%s232_s11 + $0x30] sm:$0xf] %v278_v12  ;;  %281 = vst [vmem:[%s232_s11 + $0x34] sm:$0xf] %v280_v13  ;;  %v284_v15 = vld [vmem:[%s1991_s14 + $0x78] sm:$0xf] }
  0x33   : > { %283 = vst [vmem:[%s232_s11 + $0x38] sm:$0xf] %v282_v14  ;;  %285 = vst [vmem:[%s232_s11 + $0x3c] sm:$0xf] %v284_v15 }
  0x34 PF: > { %p1403_p0 = scmp.ge.s32.totalorder %s1849_s30, 1  ;;  %p367_p1 = scmp.lt.s32.totalorder %s1849_s30, 5 }
  0x36   : > { %p368_p2 = pnand %p1403_p0, %p367_p1 }
  0x37   : > { %s374_s9 = sand.u32 (!%p368_p2), 1, %s1825_s24   ;;  %s2221_s10 = sand.u32 (!%p368_p2), 1, %s1817_s22  }
  0x38   : > { %371 = sbr.rel (%p368_p2) target bundleno = 784 (0x310), region = 81  ;;  %s1404_s13 = sshll.u32 (!%p368_p2), %s374_s9, 6 }
  0x39   : > { %s1405_s7 = sshll.u32 (!%p368_p2), %s2221_s10, 6  ;;  %s1406_s8 = sshll.u32 (!%p368_p2), %s1837_s27, 4 }
  0x3a   : > { %s1408_s12 = sshll.u32 (!%p368_p2), %s1833_s26, 4  ;;  %p420_p3 = scmp.lt.s32.totalorder (!%p368_p2), %s1406_s8, 31 }
  0x3b   : > { %p426_p4 = scmp.lt.s32.totalorder (!%p368_p2), %s1408_s12, 31  ;;  %s2032_s19 = scalar_lea.vmem (!%p368_p2), [#allocation3], %s1404_s13 }
  0x3c   : > { %p1412_p5 = scmp.ne.s32.totalorder (!%p368_p2), %s1833_s26, 0 }
  0x3d   : > { %s2254_s8 = smov (!%p420_p3, %s1406_s8), 31  ;;  %s2256_s12 = smov (!%p426_p4, %s1408_s12), 31 }
  0x3e   : > { %s1407_s16 = sshll.u32 %s2254_s8, 3  ;;  %s1409_s0 = sshll.u32 %s2256_s12, 3 }
  0x3f   : > { %s2020_s11 = scalar_lea.vmem %s2211_s1, %s1407_s16  ;;  %s2025_s24 = scalar_lea.vmem %s2212_s2, %s1409_s0 }
  0x40   : > { %s1411_s9 = sshll.u32 %s2256_s12, 2  ;;  %s2034_s8 = scalar_lea.vmem [#allocation4], %s1405_s7 }
  0x41   : > { %s2030_s25 = scalar_lea.vmem %s2213_s3, %s1411_s9  ;;  %442 = sbr.rel (%p1412_p5) target bundleno = 79 (0x4f), region = 89 }
  0x46   : > { %v1851_v16 = vmov 0.0  }
  0x47   : > { %443 = vst [vmem:[#allocation2 + $0x30] sm:$0xff] %v1851_v16  ;;  %444 = vst [vmem:[#allocation2] sm:$0xff] %v1851_v16 }
  0x48   : > { %445 = vst [vmem:[#allocation2 + $0x58] sm:$0xff] %v1851_v16  ;;  %446 = vst [vmem:[#allocation2 + $0x18] sm:$0xff] %v1851_v16 }
  0x49   : > { %447 = vst [vmem:[#allocation2 + $0x50] sm:$0xff] %v1851_v16  ;;  %448 = vst [vmem:[#allocation2 + $0x68] sm:$0xff] %v1851_v16 }
  0x4a   : > { %449 = vst [vmem:[#allocation2 + $0x8] sm:$0xff] %v1851_v16  ;;  %450 = vst [vmem:[#allocation2 + $0x48] sm:$0xff] %v1851_v16 }
  0x4b   : > { %451 = vst [vmem:[#allocation2 + $0x40] sm:$0xff] %v1851_v16  ;;  %452 = vst [vmem:[#allocation2 + $0x20] sm:$0xff] %v1851_v16 }
  0x4c   : > { %453 = vst [vmem:[#allocation2 + $0x10] sm:$0xff] %v1851_v16  ;;  %454 = vst [vmem:[#allocation2 + $0x38] sm:$0xff] %v1851_v16 }
  0x4d   : > { %455 = vst [vmem:[#allocation2 + $0x60] sm:$0xff] %v1851_v16  ;;  %456 = vst [vmem:[#allocation2 + $0x70] sm:$0xff] %v1851_v16 }
  0x4e   : > { %457 = vst [vmem:[#allocation2 + $0x78] sm:$0xff] %v1851_v16  ;;  %458 = vst [vmem:[#allocation2 + $0x28] sm:$0xff] %v1851_v16 }
  0x4f PF: > { %v1715_v17 = vld [vmem:[%s2214_s4 + $0x38] sm:$0xff]   ;;  %v1716_v18 = vld [vmem:[%s2214_s4 + $0x30] sm:$0xff]   ;;  %v1852_v19 = vmov 0   ;;  %v1717_v20 = vld [vmem:[%s2214_s4 + $0x28] sm:$0xff]   ;;  %p1437_p6 = scmp.ne.s32.totalorder %s1833_s26, 1 }
  0x50   : > { %1713 = vset.pattern.permute.xlu0 %v1852_v19  ;;  %1714 = vset.pattern.permute.xlu1 %v1852_v19  ;;  %v1718_v21 = vld [vmem:[%s2214_s4 + $0x20] sm:$0xff]   ;;  %v1719_v23 = vld [vmem:[%s2214_s4 + $0x18] sm:$0xff]   ;;  %v1720_v24 = vld [vmem:[%s2214_s4 + $0x10] sm:$0xff]  }
  0x51   : > { %1557 = vmatprep.subr.bf16.mxu0 %v1715_v17  ;;  %v1723_v22 = vld [vmem:[%s2030_s25] sm:$0xff]   ;;  %v698_v25 = vld [vmem:[%s2025_s24 + $0x70] sm:$0xff]  ;;  %v699_v27 = vld [vmem:[%s2025_s24 + $0x78] sm:$0xff] }
  0x52   : > { %1558 = vmatpush3.bf16.msra.mxu0 %v1715_v17  ;;  %1573 = vmatprep.mubr.bf16.mxu0 %v1723_v22  ;;  %v696_v26 = vld [vmem:[%s2025_s24 + $0x60] sm:$0xff]  ;;  %v697_v28 = vld [vmem:[%s2025_s24 + $0x68] sm:$0xff]  ;;  %v694_v30 = vld [vmem:[%s2025_s24 + $0x50] sm:$0xff] }
  0x53   : > { %1559 = vmatprep.subr.bf16.mxu0 %v1716_v18  ;;  %772 = vperm.xlu0 %1713, %v698_v25   ;;  %v1721_v29 = vld [vmem:[%s2214_s4 + $0x8] sm:$0xff]   ;;  %v695_v31 = vld [vmem:[%s2025_s24 + $0x58] sm:$0xff]  ;;  %v1722_v32 = vld [vmem:[%s2214_s4] sm:$0xff]  }
  0x54   : > { %762 = vperm.xlu1 %1714, %v696_v26   ;;  %v692_v33 = vld [vmem:[%s2025_s24 + $0x40] sm:$0xff]  ;;  %v693_v34 = vld [vmem:[%s2025_s24 + $0x48] sm:$0xff]  ;;  %v690_v36 = vld [vmem:[%s2025_s24 + $0x30] sm:$0xff] }
  0x55   : > { %v1724_v35 = vld [vmem:[%s2030_s25 + $0x8] sm:$0xff]   ;;  %v691_v37 = vld [vmem:[%s2025_s24 + $0x38] sm:$0xff]  ;;  %v1725_v38 = vld [vmem:[%s2030_s25 + $0x10] sm:$0xff]  }
  0x56   : > { %1560 = vmatpush3.bf16.msra.mxu0 %v1716_v18  ;;  %v688_v39 = vld [vmem:[%s2025_s24 + $0x20] sm:$0xff]  ;;  %v689_v40 = vld [vmem:[%s2025_s24 + $0x28] sm:$0xff]  ;;  %v1726_v41 = vld [vmem:[%s2030_s25 + $0x18] sm:$0xff]  }
  0x57   : > { %1561 = vmatprep.subr.bf16.mxu0 %v1717_v20  ;;  %777 = vperm.xlu0 %1713, %v699_v27   ;;  %v686_v42 = vld [vmem:[%s2025_s24 + $0x10] sm:$0xff]  ;;  %v687_v43 = vld [vmem:[%s2025_s24 + $0x18] sm:$0xff]  ;;  %v1727_v44 = vld [vmem:[%s2030_s25 + $0x20] sm:$0xff]  }
  0x58   : > { %767 = vperm.xlu1 %1714, %v697_v28   ;;  %v684_v45 = vld [vmem:[%s2025_s24] sm:$0xff]  ;;  %v685_v46 = vld [vmem:[%s2025_s24 + $0x8] sm:$0xff]  ;;  %v1729_v48 = vld [vmem:[%s2030_s25 + $0x30] sm:$0xff]  }
  0x59   : > { %v1728_v47 = vld [vmem:[%s2030_s25 + $0x28] sm:$0xff]   ;;  %v1730_v49 = vld [vmem:[%s2030_s25 + $0x38] sm:$0xff]   ;;  %v1731_v50 = vld [vmem:[%s2032_s19] sm:$0xff]  }
  0x5a   : > { %1562 = vmatpush3.bf16.msra.mxu0 %v1717_v20  ;;  %1605 = vmatprep.mubr.bf16.mxu1 %v1731_v50  ;;  %v798_v50 = vld [vmem:[#allocation2 + $0x58] sm:$0xff] }
  0x5b   : > { %1563 = vmatprep.subr.bf16.mxu0 %v1718_v21  ;;  %752 = vperm.xlu0 %1713, %v694_v30  }
  0x5c   : > { %757 = vperm.xlu1 %1714, %v695_v31  }
  0x5e   : > { %1564 = vmatpush3.bf16.msra.mxu0 %v1718_v21 }
  0x5f   : > { %1565 = vmatprep.subr.bf16.mxu0 %v1719_v23  ;;  %742 = vperm.xlu0 %1713, %v692_v33  }
  0x60   : > { %747 = vperm.xlu1 %1714, %v693_v34  }
  0x62   : > { %1566 = vmatpush3.bf16.msra.mxu0 %v1719_v23 }
  0x63   : > { %1567 = vmatprep.subr.bf16.mxu0 %v1720_v24  ;;  %732 = vperm.xlu0 %1713, %v690_v36  }
  0x64   : > { %737 = vperm.xlu1 %1714, %v691_v37  }
  0x66   : > { %1568 = vmatpush3.bf16.msra.mxu0 %v1720_v24 }
  0x67   : > { %1569 = vmatprep.subr.bf16.mxu0 %v1721_v29  ;;  %722 = vperm.xlu0 %1713, %v688_v39  }
  0x68   : > { %727 = vperm.xlu1 %1714, %v689_v40  }
  0x6a   : > { %1570 = vmatpush3.bf16.msra.mxu0 %v1721_v29 }
  0x6b   : > { %1571 = vmatprep.subr.bf16.mxu0 %v1722_v32  ;;  %712 = vperm.xlu0 %1713, %v686_v42  }
  0x6c   : > { %717 = vperm.xlu1 %1714, %v687_v43   ;;  %v1732_v43 = vld [vmem:[%s2032_s19 + $0x8] sm:$0xff]  }
  0x6e   : > { %1572 = vmatpush3.bf16.msra.mxu0 %v1722_v32 }
  0x6f   : > { %702 = vperm.xlu0 %1713, %v684_v45   ;;  %v1734_v45 = vld [vmem:[%s2032_s19 + $0x18] sm:$0xff]  }
  0x70   : > { %707 = vperm.xlu1 %1714, %v685_v46   ;;  %v1735_v46 = vld [vmem:[%s2032_s19 + $0x20] sm:$0xff]  }
  0x71   : > { %1574 = vmatmul.mubr.bf16.vlgmr.msra.gmra.mxu0 %v1724_v35 }
  0x72   : > { %1577 = vmatprep.mubr.bf16.mxu0 %v1725_v38 }
  0x79   : > { %1578 = vmatmul.mubr.bf16.gmra.mxu0 %v1726_v41 }
  0x7a   : > { %1581 = vmatprep.mubr.bf16.mxu0 %v1727_v44  ;;  %v1733_v44 = vld [vmem:[%s2032_s19 + $0x10] sm:$0xff]  }
  0x81   : > { %1582 = vmatmul.mubr.bf16.gmra.mxu0 %v1728_v47  ;;  %v1736_v47 = vld [vmem:[%s2032_s19 + $0x28] sm:$0xff]  }
  0x82   : > { %1585 = vmatprep.mubr.bf16.mxu0 %v1729_v48  ;;  %v1737_v48 = vld [vmem:[%s2032_s19 + $0x30] sm:$0xff]  }
  0x89   : > { %1586 = vmatmul.mubr.bf16.gmra.mxu0 %v1730_v49  ;;  %v1738_v49 = vld [vmem:[%s2032_s19 + $0x38] sm:$0xff]  }
  0xce   : > { %v773_v57 = vpop.permute.xlu0 %772 }
  0xcf   : > { %v763_v55 = vpop.permute.xlu1 %762 }
  0xd2   : > { %v778_v62 = vpop.permute.xlu0 %777 }
  0xd3   : > { %v768_v60 = vpop.permute.xlu1 %767 }
  0xd6   : > { %v753_v3 = vpop.permute.xlu0 %752 }
  0xd7   : > { %v758_v1 = vpop.permute.xlu1 %757 }
  0xda   : > { %v743_v8 = vpop.permute.xlu0 %742 }
  0xdb   : > { %v748_v6 = vpop.permute.xlu1 %747 }
  0xde   : > { %v733_v19 = vpop.permute.xlu0 %732 }
  0xdf   : > { %v738_v16 = vpop.permute.xlu1 %737 }
  0xe2   : > { %v723_v25 = vpop.permute.xlu0 %722 }
  0xe3   : > { %v728_v23 = vpop.permute.xlu1 %727 }
  0xe6   : > { %v713_v32 = vpop.permute.xlu0 %712 }
  0xe7   : > { %v718_v29 = vpop.permute.xlu1 %717 }
  0xea   : > { %v703_v38 = vpop.permute.xlu0 %702 }
  0xeb   : > { %v708_v36 = vpop.permute.xlu1 %707 }
 0x131   : > { %v1575_v51 = vpop.f32.mrf.mxu0 }
 0x132   : > { %v782_v37 = vmul.f32 %v1575_v51, %v713_v32 }
 0x133   : > { %v2086_v52 = vpop.f32.mrf.mxu0 }
 0x134   : > { %v780_v41 = vmul.f32 %v703_v38, %v2086_v52  ;;  %v796_v52 = vld [vmem:[#allocation2 + $0x30] sm:$0xff] }
 0x135   : > { %v1576_v53 = vpop.f32.mrf.mxu0 }
 0x136   : > { %v783_v34 = vmul.f32 %v1576_v53, %v718_v29 }
 0x137   : > { %v624_v54 = vpop.f32.mrf.mxu0 }
 0x138   : > { %v829_v39 = vpack.c.bf16 %v783_v34, %v782_v37  ;;  %v781_v40 = vmul.f32 %v708_v36, %v624_v54 }
 0x139   : > { %v1579_v56 = vpop.f32.mrf.mxu0 }
 0x13a   : > { %v786_v28 = vmul.f32 %v1579_v56, %v733_v19  ;;  %v828_v42 = vpack.c.bf16 %v781_v40, %v780_v41 }
 0x13b   : > { %v637_v58 = vpop.f32.mrf.mxu0 }
 0x13c   : > { %v784_v33 = vmul.f32 %v723_v25, %v637_v58  ;;  %v797_v58 = vld [vmem:[#allocation2] sm:$0xff] }
 0x13d   : > { %v1580_v59 = vpop.f32.mrf.mxu0 }
 0x13e   : > { %v787_v26 = vmul.f32 %v1580_v59, %v738_v16 }
 0x13f   : > { %v640_v61 = vpop.f32.mrf.mxu0 }
 0x140   : > { %v831_v30 = vpack.c.bf16 %v787_v26, %v786_v28  ;;  %v785_v31 = vmul.f32 %v728_v23, %v640_v61  ;;  %v802_v61 = vld [vmem:[#allocation2 + $0x8] sm:$0xff] }
 0x141   : > { %v1583_v63 = vpop.f32.mrf.mxu0 }
 0x142   : > { %v790_v20 = vmul.f32 %v1583_v63, %v753_v3  ;;  %v830_v35 = vpack.c.bf16 %v785_v31, %v784_v33  ;;  %v803_v3 = vld [vmem:[#allocation2 + $0x48] sm:$0xff] }
 0x143   : > { %v653_v0 = vpop.f32.mrf.mxu0 }
 0x144   : > { %v788_v24 = vmul.f32 %v743_v8, %v653_v0  ;;  %v800_v0 = vld [vmem:[#allocation2 + $0x50] sm:$0xff] }
 0x145   : > { %v1584_v2 = vpop.f32.mrf.mxu0 }
 0x146   : > { %v791_v17 = vmul.f32 %v1584_v2, %v758_v1 }
 0x147   : > { %v656_v4 = vpop.f32.mrf.mxu0 }
 0x148   : > { %v833_v21 = vpack.c.bf16 %v791_v17, %v790_v20  ;;  %v789_v22 = vmul.f32 %v748_v6, %v656_v4  ;;  %v801_v6 = vld [vmem:[#allocation2 + $0x68] sm:$0xff] }
 0x149   : > { %v1587_v5 = vpop.f32.mrf.mxu0 }
 0x14a   : > { %v794_v10 = vmul.f32 %v1587_v5, %v773_v57  ;;  %v832_v27 = vpack.c.bf16 %v789_v22, %v788_v24  ;;  %v808_v24 = vld [vmem:[#allocation2 + $0x60] sm:$0xff] }
 0x14b   : > { %v669_v7 = vpop.f32.mrf.mxu0 }
 0x14c   : > { %v792_v13 = vmul.f32 %v763_v55, %v669_v7  ;;  %v799_v55 = vld [vmem:[#allocation2 + $0x18] sm:$0xff] }
 0x14d   : > { %v1588_v9 = vpop.f32.mrf.mxu0 }
 0x14e   : > { %v795_v11 = vmul.f32 %v1588_v9, %v778_v62  ;;  %v806_v9 = vld [vmem:[#allocation2 + $0x10] sm:$0xff] }
 0x14f   : > { %v672_v12 = vpop.f32.mrf.mxu0 }
 0x150   : > { %v793_v14 = vmul.f32 %v768_v60, %v672_v12  ;;  %v835_v15 = vpack.c.bf16 %v795_v11, %v794_v10  ;;  %v804_v12 = vld [vmem:[#allocation2 + $0x40] sm:$0xff] }
 0x152   : > { %v834_v18 = vpack.c.bf16 %v793_v14, %v792_v13  ;;  %1589 = vmatprep.subr.bf16.mxu1 %v835_v15 }
 0x153   : > { %1590 = vmatpush3.bf16.msra.mxu1 %v835_v15  ;;  %v807_v15 = vld [vmem:[#allocation2 + $0x38] sm:$0xff] }
 0x154   : > { %1591 = vmatprep.subr.bf16.mxu1 %v834_v18 }
 0x157   : > { %1592 = vmatpush3.bf16.msra.mxu1 %v834_v18  ;;  %v805_v18 = vld [vmem:[#allocation2 + $0x20] sm:$0xff] }
 0x158   : > { %1593 = vmatprep.subr.bf16.mxu1 %v833_v21 }
 0x15b   : > { %1594 = vmatpush3.bf16.msra.mxu1 %v833_v21  ;;  %v810_v21 = vld [vmem:[#allocation2 + $0x78] sm:$0xff] }
 0x15c   : > { %1595 = vmatprep.subr.bf16.mxu1 %v832_v27 }
 0x15f   : > { %1596 = vmatpush3.bf16.msra.mxu1 %v832_v27  ;;  %v811_v27 = vld [vmem:[#allocation2 + $0x28] sm:$0xff] }
 0x160   : > { %1597 = vmatprep.subr.bf16.mxu1 %v831_v30 }
 0x163   : > { %1598 = vmatpush3.bf16.msra.mxu1 %v831_v30  ;;  %v809_v30 = vld [vmem:[#allocation2 + $0x70] sm:$0xff] }
 0x164   : > { %1599 = vmatprep.subr.bf16.mxu1 %v830_v35 }
 0x167   : > { %1600 = vmatpush3.bf16.msra.mxu1 %v830_v35 }
 0x168   : > { %1601 = vmatprep.subr.bf16.mxu1 %v829_v39 }
 0x16b   : > { %1602 = vmatpush3.bf16.msra.mxu1 %v829_v39 }
 0x16c   : > { %1603 = vmatprep.subr.bf16.mxu1 %v828_v42 }
 0x16f   : > { %1604 = vmatpush3.bf16.msra.mxu1 %v828_v42 }
 0x172   : > { %1606 = vmatmul.mubr.bf16.vlgmr.msra.gmra.mxu1 %v1732_v43 }
 0x173   : > { %1609 = vmatprep.mubr.bf16.mxu1 %v1733_v44 }
 0x17a   : > { %1610 = vmatmul.mubr.bf16.gmra.mxu1 %v1734_v45 }
 0x17b   : > { %1613 = vmatprep.mubr.bf16.mxu1 %v1735_v46 }
 0x182   : > { %1614 = vmatmul.mubr.bf16.gmra.mxu1 %v1736_v47 }
 0x183   : > { %1617 = vmatprep.mubr.bf16.mxu1 %v1737_v48 }
 0x18a   : > { %1618 = vmatmul.mubr.bf16.gmra.mxu1 %v1738_v49 }
 0x232   : > { %v1607_v51 = vpop.f32.mrf.mxu1 }
 0x233   : > { %v983_v53 = vadd.f32 %v1607_v51, %v798_v50 }
 0x234   : > { %v918_v54 = vpop.f32.mrf.mxu1 }
 0x235   : > { %999 = vst [vmem:[#allocation2 + $0x58] sm:$0xff] %v983_v53  ;;  %v981_v56 = vadd.f32 %v918_v54, %v796_v52 }
 0x236   : > { %v1608_v57 = vpop.f32.mrf.mxu1 }
 0x237   : > { %997 = vst [vmem:[#allocation2 + $0x30] sm:$0xff] %v981_v56  ;;  %v984_v59 = vadd.f32 %v1608_v57, %v799_v55 }
 0x238   : > { %v921_v60 = vpop.f32.mrf.mxu1 }
 0x239   : > { %1000 = vst [vmem:[#allocation2 + $0x18] sm:$0xff] %v984_v59  ;;  %v982_v62 = vadd.f32 %v921_v60, %v797_v58 }
 0x23a   : > { %v1611_v63 = vpop.f32.mrf.mxu1 }
 0x23b   : > { %998 = vst [vmem:[#allocation2] sm:$0xff] %v982_v62  ;;  %v987_v1 = vadd.f32 %v1611_v63, %v802_v61 }
 0x23c   : > { %v934_v2 = vpop.f32.mrf.mxu1 }
 0x23d   : > { %1003 = vst [vmem:[#allocation2 + $0x8] sm:$0xff] %v987_v1  ;;  %v985_v4 = vadd.f32 %v934_v2, %v800_v0 }
 0x23e   : > { %v1612_v5 = vpop.f32.mrf.mxu1 }
 0x23f   : > { %1001 = vst [vmem:[#allocation2 + $0x50] sm:$0xff] %v985_v4  ;;  %v988_v7 = vadd.f32 %v1612_v5, %v803_v3 }
 0x240   : > { %v937_v8 = vpop.f32.mrf.mxu1 }
 0x241   : > { %1004 = vst [vmem:[#allocation2 + $0x48] sm:$0xff] %v988_v7  ;;  %v986_v10 = vadd.f32 %v937_v8, %v801_v6 }
 0x242   : > { %v1615_v11 = vpop.f32.mrf.mxu1 }
 0x243   : > { %1002 = vst [vmem:[#allocation2 + $0x68] sm:$0xff] %v986_v10  ;;  %v991_v13 = vadd.f32 %v1615_v11, %v806_v9 }
 0x244   : > { %v950_v14 = vpop.f32.mrf.mxu1 }
 0x245   : > { %1007 = vst [vmem:[#allocation2 + $0x10] sm:$0xff] %v991_v13  ;;  %v989_v16 = vadd.f32 %v950_v14, %v804_v12 }
 0x246   : > { %v1616_v17 = vpop.f32.mrf.mxu1 }
 0x247   : > { %1005 = vst [vmem:[#allocation2 + $0x40] sm:$0xff] %v989_v16  ;;  %v992_v19 = vadd.f32 %v1616_v17, %v807_v15 }
 0x248   : > { %v953_v20 = vpop.f32.mrf.mxu1 }
 0x249   : > { %1008 = vst [vmem:[#allocation2 + $0x38] sm:$0xff] %v992_v19  ;;  %v990_v22 = vadd.f32 %v953_v20, %v805_v18 }
 0x24a   : > { %v1619_v23 = vpop.f32.mrf.mxu1 }
 0x24b   : > { %1006 = vst [vmem:[#allocation2 + $0x20] sm:$0xff] %v990_v22  ;;  %v995_v25 = vadd.f32 %v1619_v23, %v810_v21 }
 0x24c   : > { %v966_v26 = vpop.f32.mrf.mxu1 }
 0x24d   : > { %1011 = vst [vmem:[#allocation2 + $0x78] sm:$0xff] %v995_v25  ;;  %v993_v28 = vadd.f32 %v966_v26, %v808_v24 }
 0x24e   : > { %v1620_v29 = vpop.f32.mrf.mxu1 }
 0x24f   : > { %1009 = vst [vmem:[#allocation2 + $0x60] sm:$0xff] %v993_v28  ;;  %v996_v31 = vadd.f32 %v1620_v29, %v811_v27  ;;  %1016 = sbr.rel (%p1437_p6) target bundleno = 759 (0x2f7), region = 93 }
 0x250   : > { %v969_v32 = vpop.f32.mrf.mxu1 }
 0x251   : > { %1012 = vst [vmem:[#allocation2 + $0x28] sm:$0xff] %v996_v31  ;;  %v994_v33 = vadd.f32 %v969_v32, %v809_v30 }
 0x253   : > { %1010 = vst [vmem:[#allocation2 + $0x70] sm:$0xff] %v994_v33 }
 0x254   : > { %v1035_v34 = vld [vmem:[%s2020_s11 + $0x10] sm:$0xff]  ;;  %v1033_v35 = vld [vmem:[%s2020_s11] sm:$0xff]  ;;  %v1853_v36 = vmov 0   ;;  %v1036_v37 = vld [vmem:[%s2020_s11 + $0x18] sm:$0xff] }
 0x255   : > { %1740 = vset.pattern.permute.xlu1 %v1853_v36  ;;  %1739 = vset.pattern.permute.xlu0 %v1853_v36  ;;  %v1034_v38 = vld [vmem:[%s2020_s11 + $0x8] sm:$0xff]  ;;  %v1037_v40 = vld [vmem:[%s2020_s11 + $0x20] sm:$0xff]  ;;  %v1040_v41 = vld [vmem:[%s2020_s11 + $0x38] sm:$0xff] }
 0x256   : > { %1061 = vperm.xlu1 %1740, %v1035_v34   ;;  %1051 = vperm.xlu0 %1739, %v1033_v35   ;;  %v1038_v39 = vld [vmem:[%s2020_s11 + $0x28] sm:$0xff]  ;;  %v1039_v42 = vld [vmem:[%s2020_s11 + $0x30] sm:$0xff]  ;;  %v1041_v44 = vld [vmem:[%s2020_s11 + $0x40] sm:$0xff] }
 0x257   : > { %v1042_v43 = vld [vmem:[%s2020_s11 + $0x48] sm:$0xff]  ;;  %v1044_v45 = vld [vmem:[%s2020_s11 + $0x58] sm:$0xff]  ;;  %v1043_v46 = vld [vmem:[%s2020_s11 + $0x50] sm:$0xff] }
 0x258   : > { %v1046_v47 = vld [vmem:[%s2020_s11 + $0x68] sm:$0xff]  ;;  %v1045_v48 = vld [vmem:[%s2020_s11 + $0x60] sm:$0xff]  ;;  %v1048_v49 = vld [vmem:[%s2020_s11 + $0x78] sm:$0xff] }
 0x259   : > { %v1047_v50 = vld [vmem:[%s2020_s11 + $0x70] sm:$0xff]  ;;  %v1019_v51 = vld [vmem:[#allocation2 + $0x58] sm:$0xff]  ;;  %v2116_v55 = vld [vmem:[%s2215_s5] ss:$0 sm:$0xff] }
 0x25a   : > { %1066 = vperm.xlu1 %1740, %v1036_v37   ;;  %1056 = vperm.xlu0 %1739, %v1034_v38   ;;  %v1017_v52 = vld [vmem:[#allocation2 + $0x30] sm:$0xff]  ;;  %v1020_v58 = vld [vmem:[#allocation2 + $0x18] sm:$0xff]  ;;  %v1018_v59 = vld [vmem:[#allocation2] sm:$0xff] }
 0x25b   : > { %v1022_v2 = vld [vmem:[#allocation2 + $0x68] sm:$0xff]  ;;  %v1021_v3 = vld [vmem:[#allocation2 + $0x50] sm:$0xff]  ;;  %v1026_v26 = vld [vmem:[#allocation2 + $0x20] sm:$0xff] }
 0x25c   : > { %v1024_v14 = vld [vmem:[#allocation2 + $0x48] sm:$0xff]  ;;  %v1025_v27 = vld [vmem:[#allocation2 + $0x40] sm:$0xff]  ;;  %v1028_v37 = vld [vmem:[#allocation2 + $0x38] sm:$0xff] }
 0x25d   : > { %v1023_v15 = vld [vmem:[#allocation2 + $0x8] sm:$0xff]  ;;  %v1027_v38 = vld [vmem:[#allocation2 + $0x10] sm:$0xff] }
 0x25e   : > { %1076 = vperm.xlu1 %1740, %v1038_v39   ;;  %1071 = vperm.xlu0 %1739, %v1037_v40  }
 0x262   : > { %1086 = vperm.xlu1 %1740, %v1040_v41   ;;  %1081 = vperm.xlu0 %1739, %v1039_v42  }
 0x266   : > { %1096 = vperm.xlu1 %1740, %v1042_v43   ;;  %1091 = vperm.xlu0 %1739, %v1041_v44  }
 0x26a   : > { %1106 = vperm.xlu1 %1740, %v1044_v45   ;;  %1101 = vperm.xlu0 %1739, %v1043_v46  }
 0x26e   : > { %1116 = vperm.xlu1 %1740, %v1046_v47   ;;  %1111 = vperm.xlu0 %1739, %v1045_v48   ;;  %v1030_v48 = vld [vmem:[#allocation2 + $0x70] sm:$0xff] }
 0x272   : > { %1126 = vperm.xlu1 %1740, %v1048_v49   ;;  %1121 = vperm.xlu0 %1739, %v1047_v50   ;;  %v1029_v49 = vld [vmem:[#allocation2 + $0x60] sm:$0xff] }
 0x2d1   : > { %v1062_v53 = vpop.permute.xlu1 %1061  ;;  %v1052_v54 = vpop.permute.xlu0 %1051 }
 0x2d2   : > { %v1131_v56 = vmul.f32 %v1062_v53, %v1019_v51  ;;  %v1129_v57 = vmul.f32 %v1052_v54, %v1017_v52 }
 0x2d4   : > { %v1154_v60 = vadd.f32 %v2116_v55, %v1131_v56  ;;  %v1152_v61 = vadd.f32 %v2116_v55, %v1129_v57 }
 0x2d5   : > { %v1067_v62 = vpop.permute.xlu1 %1066  ;;  %v1057_v63 = vpop.permute.xlu0 %1056 }
 0x2d6   : > { %v1132_v0 = vmul.f32 %v1067_v62, %v1020_v58  ;;  %v1130_v1 = vmul.f32 %v1057_v63, %v1018_v59  ;;  %v1170_v6 = vmax.f32 %v1154_v60, 0.0  ;;  %v1168_v7 = vmax.f32 %v1152_v61, 0.0  ;;  %v1032_v60 = vld [vmem:[#allocation2 + $0x28] sm:$0xff]  ;;  %v1031_v61 = vld [vmem:[#allocation2 + $0x78] sm:$0xff] }
 0x2d8   : > { %v1155_v4 = vadd.f32 %v2116_v55, %v1132_v0  ;;  %v1153_v5 = vadd.f32 %v2116_v55, %v1130_v1 }
 0x2d9   : > { %v1077_v8 = vpop.permute.xlu1 %1076  ;;  %v1072_v9 = vpop.permute.xlu0 %1071 }
 0x2da   : > { %v1171_v10 = vmax.f32 %v1155_v4, 0.0  ;;  %v1169_v11 = vmax.f32 %v1153_v5, 0.0  ;;  %v1134_v12 = vmul.f32 %v1077_v8, %v1022_v2  ;;  %v1133_v13 = vmul.f32 %v1072_v9, %v1021_v3 }
 0x2dc   : > { %v1486_v16 = vpack.c.bf16 %v1171_v10, %v1170_v6  ;;  %v1481_v17 = vpack.c.bf16 %v1169_v11, %v1168_v7  ;;  %v1157_v18 = vadd.f32 %v2116_v55, %v1134_v12  ;;  %v1156_v19 = vadd.f32 %v2116_v55, %v1133_v13 }
 0x2dd   : > { %v1087_v20 = vpop.permute.xlu1 %1086  ;;  %v1082_v21 = vpop.permute.xlu0 %1081 }
 0x2de   : > { %1518 = vst [vmem:[%s2034_s8 + $0x8] sm:$0xff] %v1486_v16   ;;  %1482 = vst [vmem:[%s2034_s8] sm:$0xff] %v1481_v17   ;;  %v1173_v22 = vmax.f32 %v1157_v18, 0.0  ;;  %v1172_v23 = vmax.f32 %v1156_v19, 0.0  ;;  %v1136_v24 = vmul.f32 %v1087_v20, %v1024_v14  ;;  %v1135_v25 = vmul.f32 %v1082_v21, %v1023_v15 }
 0x2e0   : > { %v1491_v28 = vpack.c.bf16 %v1173_v22, %v1172_v23  ;;  %v1159_v29 = vadd.f32 %v2116_v55, %v1136_v24  ;;  %v1158_v30 = vadd.f32 %v2116_v55, %v1135_v25 }
 0x2e1   : > { %v1097_v31 = vpop.permute.xlu1 %1096  ;;  %v1092_v32 = vpop.permute.xlu0 %1091 }
 0x2e2   : > { %1519 = vst [vmem:[%s2034_s8 + $0x10] sm:$0xff] %v1491_v28   ;;  %v1175_v33 = vmax.f32 %v1159_v29, 0.0  ;;  %v1174_v34 = vmax.f32 %v1158_v30, 0.0  ;;  %v1138_v35 = vmul.f32 %v1097_v31, %v1026_v26  ;;  %v1137_v36 = vmul.f32 %v1092_v32, %v1025_v27 }
 0x2e4   : > { %v1496_v39 = vpack.c.bf16 %v1175_v33, %v1174_v34  ;;  %v1161_v40 = vadd.f32 %v2116_v55, %v1138_v35  ;;  %v1160_v41 = vadd.f32 %v2116_v55, %v1137_v36 }
 0x2e5   : > { %v1107_v42 = vpop.permute.xlu1 %1106  ;;  %v1102_v43 = vpop.permute.xlu0 %1101 }
 0x2e6   : > { %1520 = vst [vmem:[%s2034_s8 + $0x18] sm:$0xff] %v1496_v39   ;;  %v1177_v44 = vmax.f32 %v1161_v40, 0.0  ;;  %v1176_v45 = vmax.f32 %v1160_v41, 0.0  ;;  %v1140_v46 = vmul.f32 %v1107_v42, %v1028_v37  ;;  %v1139_v47 = vmul.f32 %v1102_v43, %v1027_v38 }
 0x2e8   : > { %v1501_v50 = vpack.c.bf16 %v1177_v44, %v1176_v45  ;;  %v1163_v51 = vadd.f32 %v2116_v55, %v1140_v46  ;;  %v1162_v52 = vadd.f32 %v2116_v55, %v1139_v47 }
 0x2e9   : > { %v1117_v53 = vpop.permute.xlu1 %1116  ;;  %v1112_v54 = vpop.permute.xlu0 %1111 }
 0x2ea   : > { %1521 = vst [vmem:[%s2034_s8 + $0x20] sm:$0xff] %v1501_v50   ;;  %v1179_v56 = vmax.f32 %v1163_v51, 0.0  ;;  %v1178_v57 = vmax.f32 %v1162_v52, 0.0  ;;  %v1142_v58 = vmul.f32 %v1117_v53, %v1030_v48  ;;  %v1141_v59 = vmul.f32 %v1112_v54, %v1029_v49 }
 0x2ec   : > { %v1506_v62 = vpack.c.bf16 %v1179_v56, %v1178_v57  ;;  %v1165_v63 = vadd.f32 %v2116_v55, %v1142_v58  ;;  %v1164_v0 = vadd.f32 %v2116_v55, %v1141_v59 }
 0x2ed   : > { %v1127_v1 = vpop.permute.xlu1 %1126  ;;  %v1122_v2 = vpop.permute.xlu0 %1121 }
 0x2ee   : > { %1522 = vst [vmem:[%s2034_s8 + $0x28] sm:$0xff] %v1506_v62   ;;  %v1181_v3 = vmax.f32 %v1165_v63, 0.0  ;;  %v1180_v4 = vmax.f32 %v1164_v0, 0.0  ;;  %v1144_v5 = vmul.f32 %v1127_v1, %v1032_v60  ;;  %v1143_v6 = vmul.f32 %v1122_v2, %v1031_v61 }
 0x2f0   : > { %v1511_v7 = vpack.c.bf16 %v1181_v3, %v1180_v4  ;;  %v1167_v8 = vadd.f32 %v2116_v55, %v1144_v5  ;;  %v1166_v9 = vadd.f32 %v2116_v55, %v1143_v6 }
 0x2f2   : > { %1523 = vst [vmem:[%s2034_s8 + $0x30] sm:$0xff] %v1511_v7   ;;  %v1183_v10 = vmax.f32 %v1167_v8, 0.0  ;;  %v1182_v11 = vmax.f32 %v1166_v9, 0.0 }
 0x2f4   : > { %v1516_v12 = vpack.c.bf16 %v1183_v10, %v1182_v11 }
 0x2f6   : > { %1524 = vst [vmem:[%s2034_s8 + $0x38] sm:$0xff] %v1516_v12  }
 0x2f7 PF: > { %s1477_s19 = sshll.u32 %s1837_s27, 10  ;;  %s1278_s13 = sshll.u32 %s2034_s8, 4  ;;  %s2149_s13 = int_to_ptr.vmem [resolvable:$true] %s1278_s13 }
 0x2f8   : > { %s2146_s10 = scalar_lea.hbm %s2216_s6, %s1477_s19  ;;  %s2235_s7 = sand.u32 1, %s1817_s22  }
 0x2f9   : > { %s2153_s12 = scalar_lea.sflag [#allocation5], %s2235_s7  ;;  %s1741_s16 = scalar_lea.vmem %s2149_s13, 1024 }
 0x2fa   : > { %p1742_p8 = scmp.ne.s32.totalorder %s2149_s13, %s1741_s16  ;;  %s1854_s27 = smov [#allocation4]  }
 0x2fb   : > { %s1745_s17 = sshll.u32 %s1854_s27, 4  ;;  %s1746_s17 = int_to_ptr.vmem [resolvable:$false] %s1745_s17 }
 0x2fc   : > { %p1743_p9 = pnand %p1742_p8, %p1964_p7  ;;  %s1747_s14 = scalar_lea.vmem %s1746_s17, 2048 }
 0x2fd   : > { %p1748_p11 = scmp.lt.s32.totalorder %s2149_s13, %s1746_s17  ;;  %p1749_p13 = scmp.lt.s32.totalorder %s1747_s14, %s1741_s16 }
 0x2fe   : > { %p1744_p10 = pneg %p1743_p9 }
 0x2ff   : > { %p1750_p0 = por %p1749_p13, %p1748_p11 }
 0x301   : > { %p1751_p1 = pnand %p1750_p0, %p1744_p10 }
 0x303   : > { %1754 = shalt.err (!%p1751_p1)
}
 0x304   : > { %s1755_s8 = scalar_lea.hbm %s2146_s10, 1024  ;;  %s1759_s28 = scalar_lea.hbm %s2216_s6, 2048 }
 0x305   : > { %p1756_p2 = scmp.ne.s32.totalorder %s2146_s10, %s1755_s8  ;;  %p1760_p5 = scmp.lt.s32.totalorder %s2146_s10, %s2216_s6 }
 0x306   : > { %p1761_p6 = scmp.lt.s32.totalorder %s1759_s28, %s1755_s8 }
 0x307   : > { %p1757_p3 = pnand %p1756_p2, %p1964_p7 }
 0x308   : > { %p1762_p8 = por %p1761_p6, %p1760_p5 }
 0x309   : > { %p1758_p4 = pneg %p1757_p3 }
 0x30b   : > { %p1763_p9 = pnand %p1762_p8, %p1758_p4 }
 0x30d   : > { %1766 = shalt.err (!%p1763_p9)
}
 0x30e   : > { %s1855_s25 = smov 64   ;;  %s1856_s26 = smov 4  }
 0x30f   : > { %1621 = dma.vmem_to_hbm [thread:$0]  (%p1964_p7), %s2149_s13, 1024, %s2146_s10, %s2153_s12, %s1855_s25, %s1855_s25, %s1856_s26  }
 0x310 PF: > { %p1627_p10 = scmp.ge.s32.totalorder %s1849_s30, 2  ;;  %s1293_s19 = sand.u32 1, %s1813_s21  }
 0x311   : > { %s1294_s11 = scalar_lea.sflag [#allocation5], %s1293_s19 }
 0x312   : > { %p1624_p11 = pnand %p1627_p10, %p1972_p12 }
 0x314   : > { %p1625_p13 = pneg %p1624_p11 }
 0x316   : > { %1808 = dma.done.wait (%p1625_p13), %s1294_s11, 1024  }
 0x317   : > { %1810 = vsyncadd (%p1625_p13), %s1294_s11, 4294966272  ;;  %s19_s30 = sadd.s32 1, %s1849_s30   ;;  %s2236_s24 = sld [smem:[#allocation12_spill]] }
 0x318   : > { %p16_p0 = scmp.ge.s32.totalorder %s19_s30, 6   ;;  %s2237_s15 = sld [smem:[#allocation7_spill]] }
 0x319   : > { %s2238_s25 = sld [smem:[#allocation13_spill]]  ;;  %s2243_s21 = smov %s1817_s22 }
 0x31a   : > { %s2239_s26 = sld [smem:[#allocation8_spill]]  ;;  %s2244_s22 = smov %s1821_s23 }
 0x31b   : > { %s2240_s27 = sld [smem:[#allocation9_spill]]  ;;  %18 = sbr.rel (!%p16_p0) target bundleno = 8 (0x8), region = 142 }
 0x31c   : > { %s2241_s28 = sld [smem:[#allocation10_spill]] }
 0x31d   : > { %s2242_s29 = sld [smem:[#allocation11_spill]]  ;;  %s2245_s23 = smov %s2236_s24 }
 0x31e   : > { %s2246_s24 = smov %s2237_s15 }
 0x320   :  { %1299 = vsyncpa [#allocation5], 1 }
 0x321   :  { %1301 = vsyncpa [#allocation5 + $0x1], 1 }

</bundles_post_ra>
